<compile_context>
chip_gen: v6e
topology: v6e:2x2x1
jax: 0.10.0
libtpu: 0.0.40
codegen_flags: <defaults>
</compile_context>

<pallas_src>
import math

import numpy as np

import jax
import jax.numpy as jnp
from jax.experimental import pallas as pl
from jax.experimental.pallas import tpu as pltpu

# ---- ArcfaceCombLoss hyper-parameters (match the module defaults) ----------
S = 30.0
M = 0.5
EASY_MARGIN = False
COS_M = math.cos(M)
SIN_M = math.sin(M)
TH = math.cos(math.pi - M)
MM = math.sin(math.pi - M) * M
EPS = 1e-8  # torch.cosine_similarity eps

_LANE = 128
_TILE_BUDGET = 28 << 20  # double-buffered working-set target; safe on 64 MiB v7x


# ---------------------------------------------------------------------------
# Kernel
# ---------------------------------------------------------------------------
def _make_kernel(w_resident, compute_dtype):
    """Kernel factory.

    w_resident: the class matrix arrives as a single (C//ct, D, ct) resident
    block (fetched once); otherwise as a streamed (1, D, ct) block per C-tile.
    compute_dtype: dtype for the post-matmul margin math (bf16 on v6e/v7x,
    f32 on v5e); accumulation is always f32.
    """
    cdt = compute_dtype

    def kernel(f_ref, w_ref, posw_ref, out_ref, m_sc, l_sc, p_sc):
        j = pl.program_id(1)

        @pl.when(j == 0)
        def _():
            m_sc[...] = jnp.full_like(m_sc, -jnp.inf)
            l_sc[...] = jnp.zeros_like(l_sc)
            p_sc[...] = jnp.zeros_like(p_sc)

        # (D, ct) bf16 weight tile: resident -> index the big block by j,
        # streamed -> the block IS the tile (leading dim 1).
        w_tile = w_ref[j] if w_resident else w_ref[0]

        # Operands are pre-normalized bf16; MXU output is cos_sim (f32 acc).
        cos = jnp.dot(f_ref[...], w_tile,
                      preferred_element_type=jnp.float32)          # (bt, ct)

        posw = posw_ref[...]                                       # (bt, ct) bf16

        # Arcface margin math in compute_dtype.  The multi-hot label mask is
        # exactly the support of pos_weight, so no separate `labels` stream.
        c = cos.astype(cdt)
        sine = jnp.sqrt(jnp.maximum(1.0 - c * c, 0.0))   # 1-cos^2 can only dip <0
        phi = c * COS_M - sine * SIN_M
        if EASY_MARGIN:
            phi = jnp.where(c > 0.0, phi, c)
        else:
            phi = jnp.where(c > TH, phi, c - MM)
        out = (jnp.where(posw > 0, phi, c) * S).astype(jnp.float32)  # (bt, ct) f32

        # Online logsumexp over C + running positive-logit sum (f32 accumulate).
        m_new = jnp.maximum(m_sc[...], jnp.max(out, axis=-1, keepdims=True))
        alpha = jnp.exp(m_sc[...] - m_new)
        l_sc[...] = alpha * l_sc[...] + jnp.sum(jnp.exp(out - m_new),
                                                axis=-1, keepdims=True)
        p_sc[...] = p_sc[...] + jnp.sum(posw.astype(jnp.float32) * out,
                                        axis=-1, keepdims=True)
        m_sc[...] = m_new

        @pl.when(j == pl.num_programs(1) - 1)
        def _():
            # Single (bt, 2) store: col 0 = logsumexp, col 1 = positive mean.
            out_ref[...] = jnp.concatenate(
                [m_sc[...] + jnp.log(l_sc[...]), p_sc[...]], axis=-1)

    return kernel


# ---------------------------------------------------------------------------
# Tile / config selection
# ---------------------------------------------------------------------------
def _divisor_tile(dim, pref, align):
    """Largest multiple of `align` that divides dim and is <= pref, else dim."""
    if dim <= pref or dim % align != 0:
        return dim
    t = min((pref // align) * align, dim)
    while t >= align:
        if dim % t == 0:
            return t
        t -= align
    return dim


def _dedup(seq):
    out = []
    for x in seq:
        if x not in out:
            out.append(x)
    return out


def _tile_bytes(bt, ct, D, C, w_resident):
    b = 2 * bt * D * 2              # f tile (bf16), double-buffered
    b += 2 * bt * ct * 2            # pos_weight tile (bf16), double-buffered
    if w_resident:
        b += 2 * C * D * 2          # whole class matrix resident (2 buffers alloc)
    else:
        b += 2 * D * ct * 2         # streamed (D, ct) weight tile, double-buffered
    b += 2 * bt * _LANE * 4         # (bt, 2) output tile, lane-padded, dbl-buffered
    b += 3 * bt * _LANE * 4         # three (bt, 1) f32 accumulators, lane-padded
    return b


def _select_tiles(B, C, D, budget=_TILE_BUDGET):
    bt_pref = 512
    # Keep >= 2 B-tiles on the "parallel" axis so both TensorCores stay busy.
    if B >= 32 and (B // 2) % 16 == 0:
        bt_pref = min(bt_pref, B // 2)
    bt_cands = _dedup(_divisor_tile(B, p, 16)
                      for p in (bt_pref, 256, 128, 64, 32, 16))
    ct_cands = _dedup(_divisor_tile(C, p, 128)
                      for p in (1024, 512, 256, 128))
    for bt in bt_cands:            # prefer large bt: fewer w^T re-streams
        for ct in ct_cands:        # then large ct: amortize per-step overhead
            if _tile_bytes(bt, ct, D, C, False) <= budget:
                return bt, ct
    return bt_cands[-1], ct_cands[-1]


def _vmem_limit(used_bytes):
    return int(min(max(2 * used_bytes, 24 << 20), 48 << 20))


def _margin_compute_dtype():
    # bf16 VPU/EUP exists on v6e/v7x; v5e (and unknown chips) keep f32.
    try:
        kind = jax.devices()[0].device_kind.lower()
    except Exception:
        return jnp.float32
    if any(tag in kind for tag in ("v6", "v7", "7x")):
        return jnp.bfloat16
    return jnp.float32


# ---------------------------------------------------------------------------
# Wrapper
# ---------------------------------------------------------------------------
def prepare_class_weights(lab_word2vec, ct):
    """L2-normalize the (C, D) class-embedding table, cast to bf16 and lay it
    out as (C//ct, D, ct) lane-dense MXU tiles.  If the table is reused across
    training steps, call this once and pass the result via `prepared_w=` to
    hoist the normalize + relayout (a full HBM pass) out of the per-step path."""
    C, D = lab_word2vec.shape
    assert C % ct == 0, (C, ct)
    w32 = lab_word2vec.astype(jnp.float32)
    # NOTE: eps clamps each squared norm (EPS^2) rather than the norm product as
    # torch.cosine_similarity does; semantics differ only for near-zero vectors.
    w_n = (w32 * jax.lax.rsqrt(
        jnp.maximum(jnp.sum(w32 * w32, -1, keepdims=True), EPS * EPS))
           ).astype(jnp.bfloat16)
    return w_n.reshape(C // ct, ct, D).transpose(0, 2, 1)   # (C//ct, D, ct)


def arcface_comb_loss(f, lab_word2vec, pos_weight, inv_len, *,
                      bt=None, ct=None, w_resident=None, prepared_w=None,
                      compute_dtype=None):
    B, D = f.shape
    C, D2 = lab_word2vec.shape
    assert D == D2 and pos_weight.shape == (B, C)

    auto_bt, auto_ct = _select_tiles(B, C, D)
    if prepared_w is not None:
        ct = prepared_w.shape[2]
    if bt is None:
        bt = auto_bt
    if ct is None:
        ct = auto_ct
    assert B % bt == 0 and C % ct == 0, (B, bt, C, ct)
    num_ct = C // ct

    if w_resident is None:
        w_resident = _tile_bytes(bt, ct, D, C, True) <= _TILE_BUDGET
    if compute_dtype is None:
        compute_dtype = _margin_compute_dtype()

    # Normalize f BEFORE the matmul (rsqrt -> EUP; removes the O(B*C) divide),
    # clamp tiny norms, cast to bf16 for the MXU.
    f32 = f.astype(jnp.float32)
    f_n = (f32 * jax.lax.rsqrt(
        jnp.maximum(jnp.sum(f32 * f32, -1, keepdims=True), EPS * EPS))
           ).astype(jnp.bfloat16)

    if prepared_w is None:
        prepared_w = prepare_class_weights(lab_word2vec, ct)
    assert prepared_w.shape == (num_ct, D, ct)

    # pos_weight values are exact multiples of 1/len -> bf16 keeps the support
    # (> 0) exact and the magnitude within ~0.4%; accumulation stays f32.
    posw_bf16 = pos_weight.astype(jnp.bfloat16)

    if w_resident:
        w_spec = pl.BlockSpec((num_ct, D, ct), lambda i, j: (0, 0, 0))
    else:
        w_spec = pl.BlockSpec((1, D, ct), lambda i, j: (j, 0, 0))

    grid = (B // bt, num_ct)
    grid_spec = pltpu.PrefetchScalarGridSpec(
        num_scalar_prefetch=0,
        grid=grid,
        in_specs=[
            pl.BlockSpec((bt, D), lambda i, j: (i, 0)),   # normalized f (bf16)
            w_spec,                                       # normalized w^T (bf16)
            pl.BlockSpec((bt, ct), lambda i, j: (i, j)),  # pos_weight (bf16)
        ],
        out_specs=pl.BlockSpec((bt, 2), lambda i, j: (i, 0)),
        scratch_shapes=[
            pltpu.VMEM((bt, 1), jnp.float32),   # running max
            pltpu.VMEM((bt, 1), jnp.float32),   # running sum-exp
            pltpu.VMEM((bt, 1), jnp.float32),   # running positive sum
        ],
    )

    used = _tile_bytes(bt, ct, D, C, w_resident)
    res = pl.pallas_call(
        _make_kernel(w_resident, compute_dtype),
        out_shape=jax.ShapeDtypeStruct((B, 2), jnp.float32),
        grid_spec=grid_spec,
        compiler_params=pltpu.CompilerParams(
            dimension_semantics=("parallel", "arbitrary"),
            vmem_limit_bytes=_vmem_limit(used)),
    )(f_n, prepared_w, posw_bf16)

    # inv_len and the global-batch mean applied outside the kernel (O(B) work);
    # the mean divides by the GLOBAL batch size regardless of bt.
    lse = res[:, 0:1]
    pos = res[:, 1:2]
    inv_len = inv_len.reshape(B, 1).astype(jnp.float32)
    return jnp.mean((lse - pos) * inv_len)


# ---------------------------------------------------------------------------
# Pure-JAX/numpy mirror of the PyTorch forward (explicit per-index loop)
# ---------------------------------------------------------------------------
def reference_loss(f, w, labels, lab_idx_np, lens_np):
    fn = jnp.linalg.norm(f, axis=-1, keepdims=True)
    wn = jnp.linalg.norm(w, axis=-1, keepdims=True)
    dots = jnp.matmul(f, w.T, precision=jax.lax.Precision.HIGHEST)
    cos = dots / jnp.maximum(fn * wn.T, EPS)
    sine = jnp.sqrt(jnp.clip(1.0 - cos * cos, 0.0, 1.0))
    phi = cos * COS_M - sine * SIN_M
    if EASY_MARGIN:
        phi = jnp.where(cos > 0.0, phi, cos)
    else:
        phi = jnp.where(cos > TH, phi, cos - MM)
    out = (labels * phi + (1.0 - labels) * cos) * S
    out_np = np.asarray(jax.device_get(out), dtype=np.float64)
    total = 0.0
    for i in range(out_np.shape[0]):
        li = int(lens_np[i])
        row = out_np[i]
        mx = row.max()
        lse = mx + np.log(np.sum(np.exp(row - mx)))
        ce = float(np.mean([lse - row[int(lab_idx_np[i, j])] for j in range(li)]))
        total += ce / li                 # "/ len(label)" in the module
    return total / out_np.shape[0]       # "/ indexs.size(0)"


if __name__ == "__main__":
    B, C, D = 32, 256, 128   # batch, num classes, embedding dim
    K_MAX = 3                # max positive labels per sample

    key = jax.random.PRNGKey(0)
    k_f, k_w, k_len, k_lab = jax.random.split(key, 4)

    f = jax.random.normal(k_f, (B, D), dtype=jnp.float32)
    lab_word2vec = jax.random.normal(k_w, (C, D), dtype=jnp.float32)

    # Synthesize train_set.lab_pinds[indexs[i]]: per-sample variable-length
    # positive-class index lists (deterministic in-script stand-in).
    # TODO(synk): the data-dependent Python loop over indexs/lab_pinds is host
    # preprocessing (pos_weight / inv_len), not part of the device kernel.
    lens = jax.random.randint(k_len, (B,), 1, K_MAX + 1)
    lab_idx = jax.random.randint(k_lab, (B, K_MAX), 0, C)
    lens_np = np.asarray(jax.device_get(lens))
    lab_idx_np = np.asarray(jax.device_get(lab_idx))

    labels_np = np.zeros((B, C), np.float32)   # multi-hot mask (reference only)
    posw_np = np.zeros((B, C), np.float32)     # per-class avg weight (1/len each hit)
    for i in range(B):
        li = int(lens_np[i])
        for jj in range(li):
            c = int(lab_idx_np[i, jj])
            labels_np[i, c] = 1.0
            posw_np[i, c] += 1.0 / li
    labels = jnp.asarray(labels_np)
    pos_weight = jnp.asarray(posw_np)
    inv_len = (1.0 / lens.astype(jnp.float32)).reshape(B, 1)

    ref = reference_loss(f, lab_word2vec, labels, lab_idx_np, lens_np)

    # Exercise: auto config (resident w, 2 B-tiles), resident w with 2 C-tiles
    # (online logsumexp across C via w_ref[j]), and the streamed-w fallback.
    configs = [
        dict(),
        dict(bt=16, ct=128, w_resident=True),
        dict(bt=16, ct=128, w_resident=False),
    ]
    for cfg in configs:
        loss = arcface_comb_loss(f, lab_word2vec, pos_weight, inv_len, **cfg)
        loss = jax.block_until_ready(loss)
        # bf16 MXU operands / bf16 margin math (x30 scale) give ~1e-1-level
        # absolute logit error worst case, well inside this tolerance.
        assert jnp.allclose(loss, ref, rtol=5e-2, atol=5e-2), \
            (cfg, float(loss), float(ref))

    print("KERNEL_OK")
</pallas_src>

<mosaic_0001>
module attributes {stable_mosaic.version = 11 : i64} {
  func.func @kernel(%arg0: i32, %arg1: i32, %arg2: memref<16x128xbf16, #tpu.memory_space<vmem>>, %arg3: memref<1x128x256xbf16, #tpu.memory_space<vmem>>, %arg4: memref<16x256xbf16, #tpu.memory_space<vmem>>, %arg5: memref<16x2xf32, #tpu.memory_space<vmem>>, %arg6: memref<16x1xf32, #tpu.memory_space<vmem>>, %arg7: memref<16x1xf32, #tpu.memory_space<vmem>>, %arg8: memref<16x1xf32, #tpu.memory_space<vmem>>) attributes {dimension_semantics = [#tpu.dimension_semantics<parallel>, #tpu.dimension_semantics<arbitrary>], iteration_bounds = array<i64: 2, 1>, scalar_prefetch = 0 : i64, scratch_operands = 3 : i64, tpu.core_type = #tpu.core_type<tc>, window_params = [{transform_indices = @transform_0, window_bounds = array<i64: 16, 128>}, {pipeline_mode = #tpu.pipeline_mode<synchronous>, transform_indices = @transform_1, window_bounds = array<i64: 1, 128, 256>}, {transform_indices = @transform_2, window_bounds = array<i64: 16, 256>}, {transform_indices = @transform_3, window_bounds = array<i64: 16, 2>}]} {
    %c0_i32 = arith.constant 0 : i32
    %0 = arith.cmpi eq, %arg1, %c0_i32 : i32
    %1 = arith.extui %0 : i1 to i32
    %c0_i32_0 = arith.constant 0 : i32
    %2 = arith.cmpi ne, %1, %c0_i32_0 : i32
    scf.if %2 {
      %cst_33 = arith.constant 0xFF800000 : f32
      %57 = vector.broadcast %cst_33 : f32 to vector<16x1xf32>
      %c0_34 = arith.constant 0 : index
      %c0_35 = arith.constant 0 : index
      %58 = vector.load %arg6[%c0_34, %c0_35] : memref<16x1xf32, #tpu.memory_space<vmem>>, vector<16x1xf32>
      tpu.vector_store %arg6[%c0_34, %c0_35], %57 {strides = array<i32>} : memref<16x1xf32, #tpu.memory_space<vmem>>, vector<16x1xf32>,
      %cst_36 = arith.constant 0.000000e+00 : f32
      %59 = vector.broadcast %cst_36 : f32 to vector<16x1xf32>
      %c0_37 = arith.constant 0 : index
      %c0_38 = arith.constant 0 : index
      %60 = vector.load %arg7[%c0_37, %c0_38] : memref<16x1xf32, #tpu.memory_space<vmem>>, vector<16x1xf32>
      tpu.vector_store %arg7[%c0_37, %c0_38], %59 {strides = array<i32>} : memref<16x1xf32, #tpu.memory_space<vmem>>, vector<16x1xf32>,
      %cst_39 = arith.constant 0.000000e+00 : f32
      %61 = vector.broadcast %cst_39 : f32 to vector<16x1xf32>
      %c0_40 = arith.constant 0 : index
      %c0_41 = arith.constant 0 : index
      %62 = vector.load %arg8[%c0_40, %c0_41] : memref<16x1xf32, #tpu.memory_space<vmem>>, vector<16x1xf32>
      tpu.vector_store %arg8[%c0_40, %c0_41], %61 {strides = array<i32>} : memref<16x1xf32, #tpu.memory_space<vmem>>, vector<16x1xf32>,
    } else {
    }
    %3 = arith.index_cast %arg1 : i32 to index
    %c0 = arith.constant 0 : index
    %c0_1 = arith.constant 0 : index
    %4 = vector.load %arg3[%3, %c0, %c0_1] : memref<1x128x256xbf16, #tpu.memory_space<vmem>>, vector<1x128x256xbf16>
    %5 = vector.shape_cast %4 : vector<1x128x256xbf16> to vector<128x256xbf16>
    %c0_2 = arith.constant 0 : index
    %c0_3 = arith.constant 0 : index
    %6 = vector.load %arg2[%c0_2, %c0_3] : memref<16x128xbf16, #tpu.memory_space<vmem>>, vector<16x128xbf16>
    %cst = arith.constant dense<0.000000e+00> : vector<16x256xf32>
    %7 = tpu.matmul %6, %5, %cst {dimension_numbers = #tpu.dot_dimension_numbers<[1], [0], [0], [1], [0, 0, 1, 1], [], []>} : vector<16x128xbf16>, vector<128x256xbf16>, vector<16x256xf32> -> vector<16x256xf32>
    %c0_4 = arith.constant 0 : index
    %c0_5 = arith.constant 0 : index
    %8 = vector.load %arg4[%c0_4, %c0_5] : memref<16x256xbf16, #tpu.memory_space<vmem>>, vector<16x256xbf16>
    %9 = arith.mulf %7, %7 : vector<16x256xf32>
    %cst_6 = arith.constant 1.000000e+00 : f32
    %10 = vector.broadcast %cst_6 : f32 to vector<16x256xf32>
    %11 = arith.subf %10, %9 : vector<16x256xf32>
    %cst_7 = arith.constant 0.000000e+00 : f32
    %12 = vector.broadcast %cst_7 : f32 to vector<16x256xf32>
    %13 = arith.maximumf %11, %12 : vector<16x256xf32>
    %14 = math.sqrt %13 : vector<16x256xf32>
    %cst_8 = arith.constant 0.87758255 : f32
    %15 = vector.broadcast %cst_8 : f32 to vector<16x256xf32>
    %16 = arith.mulf %7, %15 : vector<16x256xf32>
    %cst_9 = arith.constant 0.47942555 : f32
    %17 = vector.broadcast %cst_9 : f32 to vector<16x256xf32>
    %18 = arith.mulf %14, %17 : vector<16x256xf32>
    %19 = arith.subf %16, %18 : vector<16x256xf32>
    %cst_10 = arith.constant -0.87758255 : f32
    %20 = vector.broadcast %cst_10 : f32 to vector<16x256xf32>
    %21 = arith.cmpf ogt, %7, %20 : vector<16x256xf32>
    %cst_11 = arith.constant 0.239712775 : f32
    %22 = vector.broadcast %cst_11 : f32 to vector<16x256xf32>
    %23 = arith.subf %7, %22 : vector<16x256xf32>
    %24 = arith.select %21, %19, %23 : vector<16x256xi1>, vector<16x256xf32>
    %cst_12 = arith.constant 0.000000e+00 : bf16
    %25 = vector.broadcast %cst_12 : bf16 to vector<16x256xbf16>
    %26 = arith.cmpf ogt, %8, %25 : vector<16x256xbf16>
    %27 = arith.select %26, %24, %7 : vector<16x256xi1>, vector<16x256xf32>
    %cst_13 = arith.constant 3.000000e+01 : f32
    %28 = vector.broadcast %cst_13 : f32 to vector<16x256xf32>
    %29 = arith.mulf %27, %28 : vector<16x256xf32>
    %c0_14 = arith.constant 0 : index
    %c0_15 = arith.constant 0 : index
    %30 = vector.load %arg6[%c0_14, %c0_15] : memref<16x1xf32, #tpu.memory_space<vmem>>, vector<16x1xf32>
    %cst_16 = arith.constant dense<0xFF800000> : vector<16xf32>
    %31 = vector.multi_reduction <maximumf>, %29, %cst_16 [1] : vector<16x256xf32> to vector<16xf32>
    %32 = vector.shape_cast %31 : vector<16xf32> to vector<16x1xf32>
    %33 = arith.maximumf %30, %32 : vector<16x1xf32>
    %c0_17 = arith.constant 0 : index
    %c0_18 = arith.constant 0 : index
    %34 = vector.load %arg6[%c0_17, %c0_18] : memref<16x1xf32, #tpu.memory_space<vmem>>, vector<16x1xf32>
    %35 = arith.subf %34, %33 : vector<16x1xf32>
    %36 = math.exp %35 : vector<16x1xf32>
    %c0_19 = arith.constant 0 : index
    %c0_20 = arith.constant 0 : index
    %37 = vector.load %arg7[%c0_19, %c0_20] : memref<16x1xf32, #tpu.memory_space<vmem>>, vector<16x1xf32>
    %38 = arith.mulf %36, %37 : vector<16x1xf32>
    %39 = vector.broadcast %33 : vector<16x1xf32> to vector<16x256xf32>
    %40 = arith.subf %29, %39 : vector<16x256xf32>
    %41 = math.exp %40 : vector<16x256xf32>
    %cst_21 = arith.constant dense<0.000000e+00> : vector<16xf32>
    %42 = vector.multi_reduction <add>, %41, %cst_21 [1] : vector<16x256xf32> to vector<16xf32>
    %43 = vector.shape_cast %42 : vector<16xf32> to vector<16x1xf32>
    %44 = arith.addf %38, %43 : vector<16x1xf32>
    %c0_22 = arith.constant 0 : index
    %c0_23 = arith.constant 0 : index
    %45 = vector.load %arg7[%c0_22, %c0_23] : memref<16x1xf32, #tpu.memory_space<vmem>>, vector<16x1xf32>
    tpu.vector_store %arg7[%c0_22, %c0_23], %44 {strides = array<i32>} : memref<16x1xf32, #tpu.memory_space<vmem>>, vector<16x1xf32>,
    %c0_24 = arith.constant 0 : index
    %c0_25 = arith.constant 0 : index
    %46 = vector.load %arg8[%c0_24, %c0_25] : memref<16x1xf32, #tpu.memory_space<vmem>>, vector<16x1xf32>
    %47 = arith.extf %8 : vector<16x256xbf16> to vector<16x256xf32>
    %48 = arith.mulf %47, %29 : vector<16x256xf32>
    %cst_26 = arith.constant dense<0.000000e+00> : vector<16xf32>
    %49 = vector.multi_reduction <add>, %48, %cst_26 [1] : vector<16x256xf32> to vector<16xf32>
    %50 = vector.shape_cast %49 : vector<16xf32> to vector<16x1xf32>
    %51 = arith.addf %46, %50 : vector<16x1xf32>
    %c0_27 = arith.constant 0 : index
    %c0_28 = arith.constant 0 : index
    %52 = vector.load %arg8[%c0_27, %c0_28] : memref<16x1xf32, #tpu.memory_space<vmem>>, vector<16x1xf32>
    tpu.vector_store %arg8[%c0_27, %c0_28], %51 {strides = array<i32>} : memref<16x1xf32, #tpu.memory_space<vmem>>, vector<16x1xf32>,
    %c0_29 = arith.constant 0 : index
    %c0_30 = arith.constant 0 : index
    %53 = vector.load %arg6[%c0_29, %c0_30] : memref<16x1xf32, #tpu.memory_space<vmem>>, vector<16x1xf32>
    tpu.vector_store %arg6[%c0_29, %c0_30], %33 {strides = array<i32>} : memref<16x1xf32, #tpu.memory_space<vmem>>, vector<16x1xf32>,
    %c0_i32_31 = arith.constant 0 : i32
    %54 = arith.cmpi eq, %arg1, %c0_i32_31 : i32
    %55 = arith.extui %54 : i1 to i32
    %c0_i32_32 = arith.constant 0 : i32
    %56 = arith.cmpi ne, %55, %c0_i32_32 : i32
    scf.if %56 {
      %c0_33 = arith.constant 0 : index
      %c0_34 = arith.constant 0 : index
      %57 = vector.load %arg6[%c0_33, %c0_34] : memref<16x1xf32, #tpu.memory_space<vmem>>, vector<16x1xf32>
      %c0_35 = arith.constant 0 : index
      %c0_36 = arith.constant 0 : index
      %58 = vector.load %arg7[%c0_35, %c0_36] : memref<16x1xf32, #tpu.memory_space<vmem>>, vector<16x1xf32>
      %59 = math.log %58 : vector<16x1xf32>
      %60 = arith.addf %57, %59 : vector<16x1xf32>
      %c0_37 = arith.constant 0 : index
      %c0_38 = arith.constant 0 : index
      %61 = vector.load %arg8[%c0_37, %c0_38] : memref<16x1xf32, #tpu.memory_space<vmem>>, vector<16x1xf32>
      %62 = tpu.concatenate %60, %61 in 1 : vector<16x1xf32>, vector<16x1xf32> -> vector<16x2xf32>
      %c0_39 = arith.constant 0 : index
      %c0_40 = arith.constant 0 : index
      %63 = vector.load %arg5[%c0_39, %c0_40] : memref<16x2xf32, #tpu.memory_space<vmem>>, vector<16x2xf32>
      tpu.vector_store %arg5[%c0_39, %c0_40], %62 {strides = array<i32>} : memref<16x2xf32, #tpu.memory_space<vmem>>, vector<16x2xf32>,
    } else {
    }
    return
  }
  func.func @transform_0(%arg0: i32, %arg1: i32) -> (i32, i32) {
    %c0_i32 = arith.constant 0 : i32
    %c0_i32_0 = arith.constant 0 : i32
    return %arg0, %c0_i32 : i32, i32
  }
  func.func @transform_1(%arg0: i32, %arg1: i32) -> (i32, i32, i32) {
    %c0_i32 = arith.constant 0 : i32
    %c0_i32_0 = arith.constant 0 : i32
    %c0_i32_1 = arith.constant 0 : i32
    %c0_i32_2 = arith.constant 0 : i32
    return %c0_i32, %c0_i32_0, %c0_i32_1 : i32, i32, i32
  }
  func.func @transform_2(%arg0: i32, %arg1: i32) -> (i32, i32) {
    %c0_i32 = arith.constant 0 : i32
    return %arg0, %arg1 : i32, i32
  }
  func.func @transform_3(%arg0: i32, %arg1: i32) -> (i32, i32) {
    %c0_i32 = arith.constant 0 : i32
    %c0_i32_0 = arith.constant 0 : i32
    return %arg0, %c0_i32 : i32, i32
  }
}

</mosaic_0001>

<bundles_post_ra>
// kernel: tpu_custom_call.1
= control target key start
LH: loop header
LB: loop body
LE: loop exit
PB: predicated region body
PF: predicated region fallthrough
CT: control target
= control target key end

     0   :  { %8 = vsyncpa [#allocation6], 0  ;;  %s1325_s0 = inlined_call_operand.hbm [shape: bf16[32,128], index: 0, kind: input, shape index: {}]   ;;  %s1326_s1 = inlined_call_operand.hbm [shape: bf16[1,128,256], index: 1, kind: input, shape index: {}]   ;;  %s1327_s2 = inlined_call_operand.hbm [shape: bf16[32,256], index: 2, kind: input, shape index: {}]   ;;  %s1328_s3 = inlined_call_operand.vmem [shape: f32[32,2], index: 3, kind: output, shape index: {}]  }
   0x1   :  { %10 = vsyncpa [#allocation6 + $0x1], 0 }
   0x2   :  { %11 = vsyncpa [#allocation8], 0  ;;  %s1075_s12 = smov 0   ;;  %s1077_s13 = smov 0  }
   0x3   :  { %s1079_s14 = smov 0   ;;  %s1081_s15 = smov 0  }
   0x4   :  { %s1083_s16 = smov 0   ;;  %s1085_s17 = smov 0  }
   0x5 LB: > { %s29_s18 = sadd.s32 1, %s1038_s16  ;;  %s36_s19 = sadd.s32 1, %s1030_s14  ;;  %s1042_s17 = sphi %s1085_s17, %s17_s17   ;;  %s1038_s16 = sphi %s1083_s16, %s1344_s16   ;;  %s1034_s15 = sphi %s1081_s15, %s1343_s15   ;;  %s1030_s14 = sphi %s1079_s14, %s1342_s14   ;;  %s1026_s13 = sphi %s1077_s13, %s1341_s13   ;;  %s1022_s12 = sphi %s1075_s12, %s1340_s12  }
   0x6   : > { %p31_p0 = scmp.ge.s32.totalorder %s29_s18, 2  ;;  %p43_p1 = scmp.ne.s32.totalorder %s1030_s14, %s1026_s13 }
   0x7   : > { %p44_p2 = scmp.eq.s32.totalorder %s1042_s17, 0  ;;  %p792_p4 = scmp.lt.s32.totalorder %s1042_s17, 2 }
   0x8   : > { %s1346_s18 = smov (%p31_p0, %s29_s18), 0  ;;  %s161_s21 = sand.u32 1, %s1042_s17  }
   0x9   : > { %p45_p3 = por %p44_p2, %p43_p1  ;;  %s33_s20 = ssub.s32 %s1038_s16, %s1346_s18 }
   0xa   : > { %p34_p5 = scmp.eq.s32.totalorder %s33_s20, 0  ;;  %s163_s22 = sand.u32 1, %s1030_s14  }
   0xb   : > { %s769_s23 = sshll.u32 %s1038_s16, 7  ;;  %s733_s25 = sshll.u32 %s163_s22, 3 }
   0xc   : > { %s1119_s24 = scalar_select %p34_p5, %s1030_s14, %s36_s19  }
   0xd   : > { %s171_s28 = scalar_lea.hbm %s1325_s0, %s769_s23  ;;  %p1124_p6 = pnand %p792_p4, %p45_p3 }
   0xe   : > { %s165_s30 = scalar_lea.vmem [#allocation5], %s733_s25  ;;  %s736_s5 = sshll.u32 %s163_s22, 4 }
   0xf   : > { %s172_s4 = sshll.u32 %s165_s30, 4  ;;  %s1128_s6 = scalar_lea.sflag [#allocation6], %s161_s21  ;;  %s173_s4 = int_to_ptr.vmem [resolvable:$true] %s172_s4 }
  0x10   : > { %p904_p7 = pneg %p1124_p6  ;;  %s915_s7 = scalar_lea.vmem %s173_s4, 128 }
  0x11   : > { %p916_p8 = scmp.ne.s32.totalorder %s173_s4, %s915_s7  ;;  %s1044_s8 = smov [#allocation5]  }
  0x12   : > { %s920_s9 = sshll.u32 %s1044_s8, 4  ;;  %s921_s9 = int_to_ptr.vmem [resolvable:$false] %s920_s9 }
  0x13   : > { %p918_p9 = pnand %p916_p8, %p904_p7  ;;  %s922_s10 = scalar_lea.vmem %s921_s9, 256 }
  0x14   : > { %p923_p11 = scmp.lt.s32.totalorder %s173_s4, %s921_s9  ;;  %p924_p12 = scmp.lt.s32.totalorder %s922_s10, %s915_s7 }
  0x15   : > { %p919_p10 = pneg %p918_p9 }
  0x16   : > { %p925_p13 = por %p924_p12, %p923_p11 }
  0x18   : > { %p926_p0 = pnand %p925_p13, %p919_p10 }
  0x1a   : > { %929 = shalt.err (!%p926_p0)
}
  0x1b   : > { %s1045_s11 = smov 64   ;;  %s1046_s19 = smov 4  }
  0x1c   : > { %787 = dma.hbm_to_vmem [thread:$0]  (!%p1124_p6), %s171_s28, 128, %s173_s4, %s1128_s6, %s1045_s11, %s1045_s11, %s1046_s19  }
  0x1d   : > { %s186_s20 = scalar_lea.vmem [#allocation9], %s736_s5  ;;  %s728_s22 = sadd.s32 4294967295, %s1042_s17  }
  0x1e   : > { %s196_s21 = sshll.u32 %s186_s20, 4  ;;  %p49_p1 = scmp.ne.s32.totalorder %s1026_s13, %s1022_s12  ;;  %s197_s21 = int_to_ptr.vmem [resolvable:$true] %s196_s21 }
  0x1f   : > { %p1143_p2 = scmp.eq.s32.totalorder %s728_s22, 0  ;;  %p730_p3 = scmp.ge.s32.totalorder %s1042_s17, 1 }
  0x20   : > { %p135_p4 = scmp.lt.s32.totalorder %s1042_s17, 3  ;;  %s1047_s12 = smov [#allocation7]  }
  0x21   : > { %p1151_p5 = por %p1143_p2, %p49_p1  ;;  %s147_s27 = sshll.u32 %s1047_s12, 4  ;;  %s1159_s27 = int_to_ptr.vmem [resolvable:$true] %s147_s27 }
  0x22   : > { %p1155_p8 = pnand %p730_p3, %p135_p4  ;;  %s771_s28 = sshll.u32 %s1038_s16, 8 }
  0x23   : > { %s195_s7 = scalar_lea.hbm %s1327_s2, %s771_s28  ;;  %s943_s8 = scalar_lea.vmem %s197_s21, 256 }
  0x24   : > { %p780_p9 = pneg %p1155_p8  ;;  %p944_p11 = scmp.ne.s32.totalorder %s197_s21, %s943_s8 }
  0x25   : > { %s1048_s9 = smov [#allocation9]  }
  0x26   : > { %p1166_p10 = pnand %p780_p9, %p1143_p2  ;;  %p946_p12 = pnand %p944_p11, %p904_p7 }
  0x27   : > { %s948_s10 = sshll.u32 %s1048_s9, 4  ;;  %s949_s10 = int_to_ptr.vmem [resolvable:$false] %s948_s10 }
  0x28   : > { %p947_p13 = pneg %p946_p12  ;;  %s950_s11 = scalar_lea.vmem %s949_s10, 512 }
  0x29   : > { %p951_p0 = scmp.lt.s32.totalorder %s197_s21, %s949_s10  ;;  %p952_p1 = scmp.lt.s32.totalorder %s950_s11, %s943_s8 }
  0x2b   : > { %p953_p3 = por %p952_p1, %p951_p0 }
  0x2d   : > { %p954_p4 = pnand %p953_p3, %p947_p13 }
  0x2f   : > { %957 = shalt.err (!%p954_p4)
}
  0x30   : > { %s1049_s19 = smov 128   ;;  %s1050_s20 = smov 8  }
  0x31   : > { %790 = dma.hbm_to_vmem [thread:$0]  (!%p1124_p6), %s195_s7, 256, %s197_s21, %s1128_s6, %s1049_s19, %s1049_s19, %s1050_s20  }
  0x32   : > { %p960_p7 = pneg %p1166_p10  ;;  %s969_s12 = scalar_lea.vmem %s1159_s27, 2048 }
  0x33   : > { %p970_p9 = scmp.ne.s32.totalorder %s1159_s27, %s969_s12  ;;  %p977_p0 = scmp.lt.s32.totalorder %s1159_s27, %s1159_s27 }
  0x34   : > { %p978_p13 = scmp.lt.s32.totalorder %s969_s12, %s969_s12 }
  0x35   : > { %p972_p11 = pnand %p970_p9, %p960_p7 }
  0x36   : > { %p979_p1 = por %p978_p13, %p977_p0 }
  0x37   : > { %p973_p12 = pneg %p972_p11 }
  0x39   : > { %p980_p3 = pnand %p979_p1, %p973_p12 }
  0x3b   : > { %983 = shalt.err (!%p980_p3)
}
  0x3c   : > { %783 = dma.hbm_to_vmem [thread:$0]  (!%p1166_p10), %s1326_s1, 2048, %s1159_s27, [#allocation8], %s1049_s19, %s1049_s19, %s1050_s20  }
  0x3d   : > { %208 = sbr.rel (%p1155_p8) target bundleno = 792 (0x318), region = 32  ;;  %s210_s29 = sand.u32 (!%p1155_p8), 1, %s728_s22  }
  0x3e   : > { %s212_s6 = sand.u32 (!%p1155_p8), 1, %s1026_s13   ;;  %s211_s5 = scalar_lea.sflag (!%p1155_p8), [#allocation6], %s210_s29 }
  0x3f   : > { %s1196_s21 = sshll.u32 (!%p1155_p8), %s212_s6, 3 }
  0x40   : > { %s214_s7 = scalar_lea.vmem (!%p1155_p8), [#allocation5], %s1196_s21 }
  0x42   : > { %1009 = dma.done.wait (%p1151_p5), %s211_s5, 128  }
  0x43   : > { %1011 = vsyncadd (%p1151_p5), %s211_s5, 4294967168 }
  0x44   : > { %1013 = dma.done.wait (%p1143_p2), [#allocation8], 2048  }
  0x45   : > { %1015 = vsyncadd (%p1143_p2), [#allocation8], 4294965248  ;;  %s1207_s26 = sshll.u32 %s212_s6, 4 }
  0x46   : > { %s227_s22 = scalar_lea.vmem [#allocation9], %s1207_s26 }
  0x47   : > { %1017 = dma.done.wait (%p1151_p5), %s211_s5, 256  }
  0x48   : > { %1019 = vsyncadd (%p1151_p5), %s211_s5, 4294967040  ;;  %v1051_v0 = vmov 0   ;;  %v853_v1 = vld [vmem:[#allocation7 + $0x74] ss:$8 sps:$4 sm:$0xff]   ;;  %v855_v2 = vld [vmem:[#allocation7 + $0x70] ss:$8 sps:$4 sm:$0xff]  }
  0x49   : > { %417 = vmatprep.mubr.bf16.mxu0 %v1051_v0  ;;  %851 = vset.pattern.permute.xlu1 %v1051_v0  ;;  %v856_v3 = vld [vmem:[#allocation7 + $0x64] ss:$8 sps:$4 sm:$0xff]   ;;  %v858_v4 = vld [vmem:[#allocation7 + $0x60] ss:$8 sps:$4 sm:$0xff]   ;;  %v859_v5 = vld [vmem:[#allocation7 + $0x54] ss:$8 sps:$4 sm:$0xff]  }
  0x4a   : > { %852 = vset.pattern.permute.xlu0 %v1051_v0  ;;  %385 = vmatprep.subr.bf16.mxu0 %v853_v1  ;;  %v861_v6 = vld [vmem:[#allocation7 + $0x50] ss:$8 sps:$4 sm:$0xff]   ;;  %v862_v7 = vld [vmem:[#allocation7 + $0x44] ss:$8 sps:$4 sm:$0xff]   ;;  %v864_v8 = vld [vmem:[#allocation7 + $0x40] ss:$8 sps:$4 sm:$0xff]  }
  0x4b   : > { %386 = vmatpush1.bf16.msra.mxu0 %v855_v2  ;;  %v865_v9 = vld [vmem:[#allocation7 + $0x34] ss:$8 sps:$4 sm:$0xff]   ;;  %v867_v10 = vld [vmem:[#allocation7 + $0x30] ss:$8 sps:$4 sm:$0xff]   ;;  %v868_v11 = vld [vmem:[#allocation7 + $0x24] ss:$8 sps:$4 sm:$0xff]  }
  0x4c   : > { %387 = vmatprep.subr.bf16.mxu0 %v856_v3  ;;  %v870_v12 = vld [vmem:[#allocation7 + $0x20] ss:$8 sps:$4 sm:$0xff]   ;;  %v871_v13 = vld [vmem:[#allocation7 + $0x14] ss:$8 sps:$4 sm:$0xff]   ;;  %v873_v14 = vld [vmem:[#allocation7 + $0x10] ss:$8 sps:$4 sm:$0xff]  }
  0x4d   : > { %v874_v15 = vld [vmem:[#allocation7 + $0x4] ss:$8 sps:$4 sm:$0xff]   ;;  %v876_v16 = vld [vmem:[#allocation7] ss:$8 sps:$4 sm:$0xff]   ;;  %v877_v17 = vld [vmem:[%s214_s7] sm:$0xff]   ;;  %vm271_vm0 = vcmask 7168  }
  0x4e   : > { %v1052_v18 = vmov -inf   ;;  %v1239_v32 = vld [vmem:[%s227_s22] sm:$0xff]  ;;  %v1243_v35 = vld [vmem:[%s227_s22 + $0x8] sm:$0xff]  ;;  %s1054_s23 = smov 1   ;;  %s744_s25 = sshll.u32 %s1034_s15, 1 }
  0x4f   : > { %388 = vmatpush1.bf16.msra.mxu0 %v858_v4  ;;  %272 = vst.msk [vmem:[#allocation2] sm:$0xff] %vm271_vm0, %v1052_v18  ;;  %273 = vst.msk [vmem:[#allocation2 + $0x8] sm:$0xff] %vm271_vm0, %v1052_v18  ;;  %vm494_vm1 = vcmp.gt.bf16.partialorder %v1239_v32, 0  ;;  %vm495_vm2 = vcmp.gt.bf16.partialorder %v1243_v35, 0  ;;  %v571_v51 = vunpack.c.l.bf16 %v1243_v35  ;;  %p259_p6 = scmp.lt.s32.totalorder %s744_s25, 3 }
  0x50   : > { %389 = vmatprep.subr.bf16.mxu0 %v859_v5  ;;  %v496_v37 = vsel %vm494_vm1, 65537, %v1051_v0  ;;  %v497_v38 = vsel %vm495_vm2, 65537, %v1051_v0 }
  0x51   : > { %v498_v39 = vunpack.c.l.b16 %v496_v37  ;;  %v499_v41 = vunpack.c.h.b16 %v496_v37  ;;  %v500_v44 = vunpack.c.l.b16 %v497_v38  ;;  %v501_v50 = vunpack.c.h.b16 %v497_v38  ;;  %s1348_s25 = smov (!%p259_p6, %s744_s25), 3 }
  0x52   : > { %s745_s27 = sshll.u32 %s1348_s25, 3 }
  0x53   : > { %390 = vmatpush1.bf16.msra.mxu0 %v861_v6  ;;  %vm1249_vm5 = vcmp.ne.s32.totalorder %v498_v39, 0  ;;  %vm1253_vm6 = vcmp.ne.s32.totalorder %v499_v41, 0  ;;  %vm1260_vm10 = vcmp.ne.s32.totalorder %v500_v44, 0  ;;  %vm505_vm2 = vcmp.ne.s32.totalorder %v501_v50, 0  ;;  %s262_s9 = scalar_lea.vmem %s1328_s3, %s745_s27 }
  0x54   : > { %391 = vmatprep.subr.bf16.mxu0 %v862_v7  ;;  %v1053_v41 = vmov 0.0   ;;  %v572_v50 = vunpack.c.h.bf16 %v1243_v35 }
  0x55   : > { %276 = vst.msk [vmem:[#allocation4] sm:$0xff] %vm271_vm0, %v1053_v41  ;;  %274 = vst.msk [vmem:[#allocation3] sm:$0xff] %vm271_vm0, %v1053_v41 }
  0x56   : > { %275 = vst.msk [vmem:[#allocation3 + $0x8] sm:$0xff] %vm271_vm0, %v1053_v41  ;;  %277 = vst.msk [vmem:[#allocation4 + $0x8] sm:$0xff] %vm271_vm0, %v1053_v41 }
  0x57   : > { %392 = vmatpush1.bf16.msra.mxu0 %v864_v8 }
  0x58   : > { %393 = vmatprep.subr.bf16.mxu0 %v865_v9 }
  0x5b   : > { %394 = vmatpush1.bf16.msra.mxu0 %v867_v10 }
  0x5c   : > { %395 = vmatprep.subr.bf16.mxu0 %v868_v11 }
  0x5f   : > { %396 = vmatpush1.bf16.msra.mxu0 %v870_v12 }
  0x60   : > { %397 = vmatprep.subr.bf16.mxu0 %v871_v13 }
  0x63   : > { %398 = vmatpush1.bf16.msra.mxu0 %v873_v14 }
  0x64   : > { %399 = vmatprep.subr.bf16.mxu0 %v874_v15 }
  0x67   : > { %400 = vmatpush1.bf16.msra.mxu0 %v876_v16 }
  0x6a   : > { %418 = vmatmul.mubr.bf16.vlgmr.msra.gmra.mxu0 %v877_v17 }
 0x12a   : > { %v1221_v19 = vpop.f32.mrf.mxu0 }
 0x12b   : > { %v430_v20 = vmul.f32 %v1221_v19, %v1221_v19  ;;  %v470_v52 = vmul.f32 0.87758255, %v1221_v19  ;;  %vm482_vm8 = vcmp.gt.f32.partialorder %v1221_v19, -0.87758255  ;;  %v763_v56 = vadd.f32 -0.23971277, %v1221_v19 }
 0x12c   : > { %v1225_v21 = vpop.f32.mrf.mxu0 }
 0x12d   : > { %v434_v22 = vsub.f32 1.0, %v430_v20  ;;  %v431_v23 = vmul.f32 %v1225_v21, %v1225_v21  ;;  %v471_v61 = vmul.f32 0.87758255, %v1225_v21  ;;  %vm483_vm11 = vcmp.gt.f32.partialorder %v1225_v21, -0.87758255 }
 0x12e   : > { %v1229_v24 = vpop.f32.mrf.mxu0  ;;  %v764_v2 = vadd.f32 -0.23971277, %v1225_v21 }
 0x12f   : > { %v438_v25 = vmax.f32 %v434_v22, 0.0  ;;  %v435_v26 = vsub.f32 1.0, %v431_v23  ;;  %v432_v27 = vmul.f32 %v1229_v24, %v1229_v24  ;;  %v472_v7 = vmul.f32 0.87758255, %v1229_v24 }
 0x130   : > { %v1233_v28 = vpop.f32.mrf.mxu0  ;;  %vm484_vm15 = vcmp.gt.f32.partialorder %v1229_v24, -0.87758255  ;;  %v765_v15 = vadd.f32 -0.23971277, %v1229_v24 }
 0x131   : > { %878 = vrsqrt.f32 %v438_v25  ;;  %v439_v29 = vmax.f32 %v435_v26, 0.0  ;;  %v436_v30 = vsub.f32 1.0, %v432_v27  ;;  %v433_v31 = vmul.f32 %v1233_v28, %v1233_v28 }
 0x132   : > { %vm444_vm3 = vcmp.eq.f32.partialorder %v438_v25, inf  ;;  %v447_v43 = vand.u32 2147483648, %v438_v25  ;;  %vm446_vm4 = vcmp.eq.f32.partialorder %v438_v25, 0.0  ;;  %v473_v18 = vmul.f32 0.87758255, %v1233_v28 }
 0x133   : > { %880 = vrsqrt.f32 %v439_v29  ;;  %v440_v33 = vmax.f32 %v436_v30, 0.0  ;;  %v437_v34 = vsub.f32 1.0, %v433_v31  ;;  %vm451_vm7 = vcmp.eq.f32.partialorder %v439_v29, inf }
 0x134   : > { %v454_v54 = vand.u32 2147483648, %v439_v29  ;;  %vm453_vm9 = vcmp.eq.f32.partialorder %v439_v29, 0.0  ;;  %v766_v26 = vadd.f32 -0.23971277, %v1233_v28 }
 0x135   : > { %882 = vrsqrt.f32 %v440_v33  ;;  %v441_v36 = vmax.f32 %v437_v34, 0.0  ;;  %vm458_vm12 = vcmp.eq.f32.partialorder %v440_v33, inf  ;;  %v461_v0 = vand.u32 2147483648, %v440_v33 }
 0x136   : > { %vm460_vm13 = vcmp.eq.f32.partialorder %v440_v33, 0.0 }
 0x137   : > { %884 = vrsqrt.f32 %v441_v36  ;;  %vm465_vm14 = vcmp.eq.f32.partialorder %v441_v36, inf  ;;  %v468_v10 = vand.u32 2147483648, %v441_v36  ;;  %vm467_vm1 = vcmp.eq.f32.partialorder %v441_v36, 0.0 }
 0x13e   : > { %v879_v40 = vpop.eup %878 }
 0x13f   : > { %v443_v42 = vmul.f32 %v879_v40, %v438_v25 }
 0x140   : > { %v881_v45 = vpop.eup %880 }
 0x141   : > { %v445_v46 = vsel %vm444_vm3, %v438_v25, %v443_v42  ;;  %v450_v49 = vmul.f32 %v881_v45, %v439_v29  ;;  %vm485_vm3 = vcmp.gt.f32.partialorder %v1233_v28, -0.87758255 }
 0x142   : > { %v448_v48 = vsel %vm446_vm4, %v447_v43, %v445_v46  ;;  %v883_v55 = vpop.eup %882  ;;  %v567_v46 = vld [vmem:[#allocation4] sm:$0xff]  ;;  %vm614_vm4 = vcmask 15360  }
 0x143   : > { %v474_v53 = vmul.f32 0.47942555, %v448_v48  ;;  %v452_v57 = vsel %vm451_vm7, %v439_v29, %v450_v49  ;;  %v457_v62 = vmul.f32 %v883_v55, %v440_v33 }
 0x144   : > { %v455_v60 = vsel %vm453_vm9, %v454_v54, %v452_v57  ;;  %v885_v1 = vpop.eup %884 }
 0x145   : > { %v478_v59 = vsub.f32 %v470_v52, %v474_v53  ;;  %v475_v63 = vmul.f32 0.47942555, %v455_v60  ;;  %v459_v3 = vsel %vm458_vm12, %v440_v33, %v457_v62  ;;  %v464_v8 = vmul.f32 %v885_v1, %v441_v36 }
 0x146   : > { %v462_v6 = vsel %vm460_vm13, %v461_v0, %v459_v3 }
 0x147   : > { %v490_v4 = vsel %vm482_vm8, %v478_v59, %v763_v56  ;;  %v479_v5 = vsub.f32 %v471_v61, %v475_v63  ;;  %v476_v9 = vmul.f32 0.47942555, %v462_v6  ;;  %v466_v12 = vsel %vm465_vm14, %v441_v36, %v464_v8 }
 0x148   : > { %v506_v11 = vsel %vm1249_vm5, %v490_v4, %v1221_v19  ;;  %v469_v16 = vsel %vm467_vm1, %v468_v10, %v466_v12  ;;  %v569_v36 = vunpack.c.l.bf16 %v1239_v32 }
 0x149   : > { %v491_v13 = vsel %vm483_vm11, %v479_v5, %v764_v2  ;;  %v480_v14 = vsub.f32 %v472_v7, %v476_v9  ;;  %v477_v20 = vmul.f32 0.47942555, %v469_v16  ;;  %v510_v22 = vmul.f32 30.0, %v506_v11  ;;  %v568_v7 = vld [vmem:[#allocation4 + $0x8] sm:$0xff] }
 0x14a   : > { %v507_v17 = vsel %vm1253_vm6, %v491_v13, %v1225_v21  ;;  %v570_v21 = vunpack.c.h.bf16 %v1239_v32  ;;  %v515_v32 = vld [vmem:[#allocation2 + $0x8] sm:$0xff] }
 0x14b   : > { %v511_v19 = vmul.f32 30.0, %v507_v17  ;;  %v492_v23 = vsel %vm484_vm15, %v480_v14, %v765_v15  ;;  %v481_v25 = vsub.f32 %v473_v18, %v477_v20  ;;  %v573_v39 = vmul.f32 %v569_v36, %v510_v22  ;;  %v530_v14 = vld [vmem:[#allocation3] sm:$0xff]  ;;  %v531_v20 = vld [vmem:[#allocation3 + $0x8] sm:$0xff] }
 0x14c   : > { %v508_v29 = vsel %vm1260_vm10, %v492_v23, %v1229_v24  ;;  %v514_v24 = vld [vmem:[#allocation2] sm:$0xff] }
 0x14d   : > { %v516_v27 = vmax.f32 %v510_v22, %v511_v19  ;;  %v493_v30 = vsel %vm485_vm3, %v481_v25, %v766_v26  ;;  %v512_v33 = vmul.f32 30.0, %v508_v29  ;;  %v574_v38 = vmul.f32 %v570_v21, %v511_v19 }
 0x14e   : > { %v509_v31 = vsel %vm505_vm2, %v493_v30, %v1233_v28 }
 0x14f   : > { %517 = vmax.xlane.f32.xlu0 %v516_v27  ;;  %v513_v34 = vmul.f32 30.0, %v509_v31  ;;  %v577_v40 = vadd.f32 %v574_v38, %v573_v39  ;;  %v575_v53 = vmul.f32 %v571_v51, %v512_v33 }
 0x151   : > { %v519_v37 = vmax.f32 %v512_v33, %v513_v34  ;;  %v576_v52 = vmul.f32 %v572_v50, %v513_v34 }
 0x153   : > { %520 = vmax.xlane.f32.xlu0 %v519_v37  ;;  %v580_v54 = vadd.f32 %v576_v52, %v575_v53 }
 0x157   : > { %578 = vadd.xlane.f32.xlu0 %v577_v40 }
 0x1d8   : > { %v518_v28 = vpop.xlane.xlu0 %517 }
 0x1d9   : > { %v522_v42 = vmax.f32 %v514_v24, %v518_v28 }
 0x1db   : > { %v524_v43 = vsub.f32 %v514_v24, %v522_v42  ;;  %587 = vst.msk [vmem:[#allocation2] sm:$0xff] %vm271_vm0, %v522_v42  ;;  %536 = vperm.xlu1 %851, %v522_v42  }
 0x1dc   : > { %v521_v44 = vpop.xlane.xlu0 %520 }
 0x1dd   : > { %v523_v45 = vmax.f32 %v515_v32, %v521_v44  ;;  %v526_v11 = vmul.f32 1.442695, %v524_v43 }
 0x1df   : > { %v525_v47 = vsub.f32 %v515_v32, %v523_v45  ;;  %588 = vst.msk [vmem:[#allocation2 + $0x8] sm:$0xff] %vm271_vm0, %v523_v45  ;;  %541 = vperm.xlu1 %851, %v523_v45  }
 0x1e0   : > { %v579_v48 = vpop.xlane.xlu0 %578 }
 0x1e1   : > { %v583_v49 = vadd.f32 %v579_v48, %v567_v46  ;;  %v528_v12 = vmul.f32 1.442695, %v525_v47 }
 0x1e2   : > { %v592_v30 = vld [vmem:[#allocation2] sm:$0xff] }
 0x1e3   : > { %585 = vst.msk [vmem:[#allocation4] sm:$0xff] %vm271_vm0, %v583_v49 }
 0x1e6   : > { %v593_v37 = vld [vmem:[#allocation2 + $0x8] sm:$0xff] }
 0x1ea   : > { %v602_v6 = vld [vmem:[#allocation4] sm:$0xff] }
 0x203   : > { %581 = vadd.xlane.f32.xlu1 %v580_v54 }
 0x256   : > { %v537_v55 = vpop.permute.xlu1 %536 }
 0x257   : > { %v544_v56 = vsub.f32 %v510_v22, %v537_v55  ;;  %v545_v57 = vsub.f32 %v511_v19, %v537_v55 }
 0x259   : > { %v548_v58 = vmul.f32 1.442695, %v544_v56  ;;  %v550_v59 = vmul.f32 1.442695, %v545_v57 }
 0x25a   : > { %v542_v60 = vpop.permute.xlu1 %541 }
 0x25b   : > { %886 = vpow2.f32 %v548_v58  ;;  %v546_v61 = vsub.f32 %v512_v33, %v542_v60  ;;  %v547_v62 = vsub.f32 %v513_v34, %v542_v60 }
 0x25c   : > { %888 = vpow2.f32 %v550_v59 }
 0x25d   : > { %v552_v63 = vmul.f32 1.442695, %v546_v61  ;;  %v554_v0 = vmul.f32 1.442695, %v547_v62 }
 0x25f   : > { %890 = vpow2.f32 %v552_v63 }
 0x260   : > { %892 = vpow2.f32 %v554_v0 }
 0x261   : > { %894 = vpow2.f32 %v526_v11 }
 0x262   : > { %896 = vpow2.f32 %v528_v12 }
 0x268   : > { %v887_v1 = vpop.eup %886 }
 0x269   : > { %v889_v35 = vpop.eup %888 }
 0x26a   : > { %v556_v2 = vadd.f32 %v889_v35, %v887_v1 }
 0x26c   : > { %557 = vadd.xlane.f32.xlu0 %v556_v2  ;;  %v891_v3 = vpop.eup %890 }
 0x26d   : > { %v893_v4 = vpop.eup %892 }
 0x26e   : > { %v559_v5 = vadd.f32 %v893_v4, %v891_v3  ;;  %v895_v13 = vpop.eup %894 }
 0x26f   : > { %v532_v15 = vmul.f32 %v895_v13, %v530_v14  ;;  %v897_v18 = vpop.eup %896 }
 0x270   : > { %560 = vadd.xlane.f32.xlu0 %v559_v5  ;;  %v533_v22 = vmul.f32 %v897_v18, %v531_v20 }
 0x286   : > { %606 = vrot.lane.b32.xlu0 %v602_v6, %s1054_s23 }
 0x28c   : > { %v582_v8 = vpop.xlane.xlu1 %581 }
 0x28d   : > { %v584_v9 = vadd.f32 %v582_v8, %v568_v7 }
 0x28f   : > { %586 = vst.msk [vmem:[#allocation4 + $0x8] sm:$0xff] %vm271_vm0, %v584_v9 }
 0x296   : > { %v603_v10 = vld [vmem:[#allocation4 + $0x8] sm:$0xff] }
 0x297   : > { %608 = vrot.lane.b32.xlu0 %v603_v10, %s1054_s23 }
 0x2f5   : > { %v558_v16 = vpop.xlane.xlu0 %557 }
 0x2f6   : > { %v562_v17 = vadd.f32 %v558_v16, %v532_v15 }
 0x2f8   : > { %565 = vst.msk [vmem:[#allocation3] sm:$0xff] %vm271_vm0, %v562_v17 }
 0x2f9   : > { %v561_v19 = vpop.xlane.xlu0 %560 }
 0x2fa   : > { %v563_v23 = vadd.f32 %v561_v19, %v533_v22 }
 0x2fc   : > { %566 = vst.msk [vmem:[#allocation3 + $0x8] sm:$0xff] %vm271_vm0, %v563_v23 }
 0x2fd   : > { %v607_v31 = vpop.permute.xlu0 %606 }
 0x2ff   : > { %v594_v25 = vld [vmem:[#allocation3] sm:$0xff] }
 0x300   : > { %898 = vlog2.f32 %v594_v25 }
 0x303   : > { %v595_v26 = vld [vmem:[#allocation3 + $0x8] sm:$0xff] }
 0x304   : > { %900 = vlog2.f32 %v595_v26 }
 0x309   : > { %v609_v39 = vpop.permute.xlu0 %608 }
 0x30d   : > { %v899_v27 = vpop.eup %898 }
 0x30e   : > { %v597_v29 = vmul.f32 0.6931472, %v899_v27 }
 0x310   : > { %v600_v21 = vadd.f32 %v597_v29, %v592_v30 }
 0x311   : > { %v901_v34 = vpop.eup %900 }
 0x312   : > { %v612_v33 = vsel %vm271_vm0, %v600_v21, %v607_v31  ;;  %v599_v36 = vmul.f32 0.6931472, %v901_v34 }
 0x313   : > { %615 = vst.msk [vmem:[%s262_s9] sm:$0xff] %vm614_vm4, %v612_v33 }
 0x314   : > { %v601_v38 = vadd.f32 %v599_v36, %v593_v37 }
 0x316   : > { %v613_v40 = vsel %vm271_vm0, %v601_v38, %v609_v39 }
 0x317   : > { %616 = vst.msk [vmem:[%s262_s9 + $0x8] sm:$0xff] %vm614_vm4, %v613_v40 }
 0x318 PF: > { %s17_s17 = sadd.s32 1, %s1042_s17   ;;  %s1340_s12 = smov %s1026_s13 }
 0x319   : > { %p14_p2 = scmp.ge.s32.totalorder %s17_s17, 4   ;;  %s1341_s13 = smov %s1030_s14 }
 0x31a   : > { %s1342_s14 = smov %s1119_s24  ;;  %s1343_s15 = smov %s1038_s16 }
 0x31b   : > { %s1344_s16 = smov %s1346_s18  ;;  %16 = sbr.rel (!%p14_p2) target bundleno = 5 (0x5), region = 96 }
 0x320   :  { %639 = vsyncpa [#allocation6], 1 }
 0x321   :  { %641 = vsyncpa [#allocation6 + $0x1], 1 }
 0x322   :  { %642 = vsyncpa [#allocation8], 1 }

</bundles_post_ra>
